<compile_context>
chip_gen: v7x
topology: tpu7x:2x2x1
jax: 0.10.0
libtpu: 0.0.40
codegen_flags: <defaults>
</compile_context>

<pallas_src>
import math

import jax
import jax.numpy as jnp
from jax.experimental import pallas as pl
from jax.experimental.pallas import tpu as pltpu

_INV_SQRT2 = 1.0 / math.sqrt(2.0)
_SQRT_2_OVER_PI = math.sqrt(2.0 / math.pi)


def _gelu_kernel_exact(x_ref, o_ref):
    # Exact GeLU: x * 0.5 * (1 + erf(x / sqrt(2)))  == F.gelu(x) (torch default).
    # Math in f32: required on v5e (no bf16 VPU/EUP), matches torch numerics everywhere.
    # Partial last block: OOB input lanes hold garbage, but erf of any finite/non-finite
    # value cannot fault and those output lanes are masked on store — no guard needed.
    xf = x_ref[...].astype(jnp.float32)
    y = xf * 0.5 * (1.0 + jax.lax.erf(xf * jnp.float32(_INV_SQRT2)))
    o_ref[...] = y.astype(o_ref.dtype)


def _gelu_kernel_tanh(x_ref, o_ref):
    # Opt-in tanh approximation (== F.gelu(approximate='tanh')).  tanh goes to the EUP
    # slot, so per-element VPU work collapses — use on v7x / bf16-v6e when the exact erf
    # polynomial makes the kernel VALU-bound.  NOT the torch default; never used silently.
    xf = x_ref[...].astype(jnp.float32)
    inner = jnp.float32(_SQRT_2_OVER_PI) * (xf + jnp.float32(0.044715) * (xf * xf * xf))
    y = 0.5 * xf * (1.0 + jnp.tanh(inner))
    o_ref[...] = y.astype(o_ref.dtype)


def _min_sublane(dtype):
    itemsize = jnp.dtype(dtype).itemsize
    if itemsize >= 4:
        return 8
    if itemsize == 2:
        return 16
    return 32


_LANE_CANDIDATES = (2048, 1024, 512, 256, 128)


def gelu_pallas(x, *, approximate=False):
    """GeLU applied elementwise via a lane-dense streaming Pallas TPU kernel.

    approximate=False (default): exact erf-based GeLU, same numerics as F.gelu(x).
    approximate=True: tanh approximation (F.gelu(x, approximate='tanh')) — opt-in only.
    """
    orig_shape = x.shape
    dtype = x.dtype
    itemsize = jnp.dtype(dtype).itemsize
    total = x.size
    if total == 0:
        return x

    # --- Lane-dense 2D layout: widest lane that divides the flat size (no padding). ---
    lane = None
    for cand in _LANE_CANDIDATES:
        if total % cand == 0:
            lane = cand
            break

    padded_total = total
    if lane is None:
        # Ragged flat size (not a multiple of 128): pad the tail to the next multiple of
        # 128.  This is the only case that incurs a wrapper-side copy; GeLU(0)==0 so the
        # zero pad is benign and sliced off below.
        lane = 128
        padded_total = pl.cdiv(total, lane) * lane

    flat = x.reshape(-1)
    if padded_total != total:
        flat = jnp.pad(flat, (0, padded_total - total))
    rows = padded_total // lane
    x2d = flat.reshape(rows, lane)

    # --- Tile: ~4 MiB blocks (sublane-rounded); partial last block handled by masking. ---
    sub = _min_sublane(dtype)
    target_bytes = 4 * 1024 * 1024
    tile_rows = max(sub, (target_bytes // (lane * itemsize)) // sub * sub)
    if rows <= tile_rows:
        # Single block covering the whole array: block dims equal full array dims (legal
        # even when rows is not a multiple of 8).
        tile_rows = rows
        grid = (1,)
    else:
        # cdiv grid: last block may be partial; Pallas masks its stores.  No row padding.
        grid = (pl.cdiv(rows, tile_rows),)

    kernel = _gelu_kernel_tanh if approximate else _gelu_kernel_exact

    out2d = pl.pallas_call(
        kernel,
        out_shape=jax.ShapeDtypeStruct((rows, lane), dtype),
        grid_spec=pl.GridSpec(
            grid=grid,
            in_specs=[pl.BlockSpec((tile_rows, lane), lambda i: (i, 0))],
            out_specs=pl.BlockSpec((tile_rows, lane), lambda i: (i, 0)),
        ),
        compiler_params=pltpu.CompilerParams(
            # "parallel" lets the 1D stream shard across both TensorCores on v7x;
            # no-op on single-TC v5e/v6e.
            dimension_semantics=("parallel",),
            # 2x(in)+2x(out) double-buffered 4 MiB tiles = 16 MiB; 32 MiB limit leaves
            # headroom on every generation (v5e/v6e physical 128 MiB, v7x 64 MiB).
            vmem_limit_bytes=32 * 1024 * 1024,
        ),
        cost_estimate=pl.CostEstimate(
            flops=30 * padded_total,          # ~30 VPU ops/elem for the erf expansion
            transcendentals=padded_total,
            bytes_accessed=2 * padded_total * itemsize,
        ),
    )(x2d)

    out_flat = out2d.reshape(-1)
    if padded_total != total:
        out_flat = out_flat[:total]
    return out_flat.reshape(orig_shape)


if __name__ == "__main__":
    key = jax.random.PRNGKey(0)

    # Small transformer-ish activation: batch=2, seq=8, hidden=32  (flat size 512 -> lane=512, no pad)
    x = jax.random.normal(key, (2, 8, 32), dtype=jnp.float32)
    y = jax.block_until_ready(gelu_pallas(x))
    y_ref = jax.nn.gelu(x, approximate=False)
    assert y.shape == x.shape and y.dtype == x.dtype
    assert jnp.allclose(y, y_ref, atol=1e-6, rtol=1e-6), "mismatch vs reference (clean shape)"

    # Ragged flat size (4000 not a multiple of 128) exercises the pad fallback path.
    x2 = jax.random.normal(jax.random.PRNGKey(1), (4, 1000), dtype=jnp.float32)
    y2 = jax.block_until_ready(gelu_pallas(x2))
    y2_ref = jax.nn.gelu(x2, approximate=False)
    assert jnp.allclose(y2, y2_ref, atol=1e-6, rtol=1e-6), "mismatch vs reference (ragged shape)"

    print("KERNEL_OK")
</pallas_src>

<mosaic_0001>
module attributes {stable_mosaic.version = 11 : i64} {
  func.func @_gelu_kernel_exact(%arg0: i32, %arg1: memref<1x512xf32, #tpu.memory_space<vmem>>, %arg2: memref<1x512xf32, #tpu.memory_space<vmem>>) attributes {dimension_semantics = [#tpu.dimension_semantics<parallel>], iteration_bounds = array<i64: 1>, scalar_prefetch = 0 : i64, scratch_operands = 0 : i64, tpu.core_type = #tpu.core_type<tc>, window_params = [{transform_indices = @transform_0, window_bounds = array<i64: 1, 512>}, {transform_indices = @transform_1, window_bounds = array<i64: 1, 512>}]} {
    %c0 = arith.constant 0 : index
    %c0_0 = arith.constant 0 : index
    %0 = vector.load %arg1[%c0, %c0_0] : memref<1x512xf32, #tpu.memory_space<vmem>>, vector<1x512xf32>
    %cst = arith.constant 5.000000e-01 : f32
    %1 = vector.broadcast %cst : f32 to vector<1x512xf32>
    %2 = arith.mulf %0, %1 : vector<1x512xf32>
    %cst_1 = arith.constant 0.707106769 : f32
    %3 = vector.broadcast %cst_1 : f32 to vector<1x512xf32>
    %4 = arith.mulf %0, %3 : vector<1x512xf32>
    %5 = math.erf %4 : vector<1x512xf32>
    %cst_2 = arith.constant 1.000000e+00 : f32
    %6 = vector.broadcast %cst_2 : f32 to vector<1x512xf32>
    %7 = arith.addf %6, %5 : vector<1x512xf32>
    %8 = arith.mulf %2, %7 : vector<1x512xf32>
    %c0_3 = arith.constant 0 : index
    %c0_4 = arith.constant 0 : index
    %9 = vector.load %arg2[%c0_3, %c0_4] : memref<1x512xf32, #tpu.memory_space<vmem>>, vector<1x512xf32>
    tpu.vector_store %arg2[%c0_3, %c0_4], %8 {strides = array<i32>} : memref<1x512xf32, #tpu.memory_space<vmem>>, vector<1x512xf32>,
    return
  }
  func.func @transform_0(%arg0: i32) -> (i32, i32) {
    %c0_i32 = arith.constant 0 : i32
    %c0_i32_0 = arith.constant 0 : i32
    return %arg0, %c0_i32 : i32, i32
  }
  func.func @transform_1(%arg0: i32) -> (i32, i32) {
    %c0_i32 = arith.constant 0 : i32
    %c0_i32_0 = arith.constant 0 : i32
    return %arg0, %c0_i32 : i32, i32
  }
}

</mosaic_0001>

<bundles_post_ra>
// kernel: tpu_custom_call.1
= control target key start
LH: loop header
LB: loop body
LE: loop exit
PB: predicated region body
PF: predicated region fallthrough
CT: control target
= control target key end

     0   :  { %6 = vsyncpa [#allocation3], 0  ;;  %s135_s0 = inlined_call_operand.hbm [shape: f32[1,512], index: 0, kind: input, shape index: {}]   ;;  %s136_s1 = inlined_call_operand.hbm [shape: f32[1,512], index: 1, kind: output, shape index: {}]  }
   0x1   :  { %7 = vsyncpa [#allocation4], 0  ;;  %s99_s6 = smov [#allocation2]   ;;  %s51_s10 = scalar_lea.hbm %s135_s0, 64 }
   0x2   :  { %s14_s7 = sshll.u32 %s99_s6, 4  ;;  %p52_p0 = scmp.ne.s32.totalorder %s135_s0, %s51_s10  ;;  %s15_s7 = int_to_ptr.vmem [resolvable:$true] %s14_s7 }
   0x3   :  { %p55_p1 = scmp.lt.u32.totalorder %s51_s10, %s135_s0 }
   0x5   :  { %p57_p2 = pnand %p55_p1, %p52_p0 }
   0x7   :  { %60 = shalt.err (!%p57_p2)
}
   0x8   :  { %s61_s15 = scalar_lea.vmem %s15_s7, 64  ;;  %p66_p4 = scmp.lt.s32.totalorder %s15_s7, %s15_s7 }
   0x9   :  { %p62_p3 = scmp.ne.s32.totalorder %s15_s7, %s61_s15  ;;  %p67_p5 = scmp.lt.s32.totalorder %s61_s15, %s61_s15 }
   0xb   :  { %p68_p6 = por %p67_p5, %p66_p4 }
   0xd   :  { %p69_p7 = pnand %p68_p6, %p62_p3 }
   0xf   :  { %72 = shalt.err (!%p69_p7)
}
  0x10   :  { %17 = dma.hbm_to_vmem [thread:$0]  %s135_s0, 64, %s15_s7, [#allocation3]  }
  0x11   :  { %95 = dma.done.wait [#allocation3], 64  }
  0x12   :  { %96 = vsyncadd [#allocation3], 4294967232  ;;  %v21_v0 = vld [vmem:[#allocation2] sm:$0xf]  ;;  %v27_v2 = vlaneseq  ;;  %s100_s18 = smov [#allocation5]  }
  0x13   :  { %v23_v1 = vmul.f32 0.70710677, %v21_v0  ;;  %v22_v3 = vmul.f32 0.5, %v21_v0  ;;  %s38_s19 = sshll.u32 %s100_s18, 4  ;;  %s39_s19 = int_to_ptr.vmem [resolvable:$true] %s38_s19 }
  0x14   :  { %vm29_vm0 = vcmp.lt.s32.totalorder %v27_v2, 512  ;;  %s73_s20 = scalar_lea.vmem %s39_s19, 64  ;;  %p78_p9 = scmp.lt.s32.totalorder %s39_s19, %s39_s19 }
  0x15   :  { %49 = verf.f32 %v23_v1  ;;  %p74_p8 = scmp.ne.s32.totalorder %s39_s19, %s73_s20  ;;  %p79_p10 = scmp.lt.s32.totalorder %s73_s20, %s73_s20 }
  0x17   :  { %p80_p11 = por %p79_p10, %p78_p9 }
  0x19   :  { %p81_p12 = pnand %p80_p11, %p74_p8 }
  0x1f   :  { %v50_v4 = vpop.eup %49 }
  0x20   :  { %v25_v5 = vadd.f32 1.0, %v50_v4 }
  0x22   :  { %v26_v6 = vmul.f32 %v25_v5, %v22_v3 }
  0x24   :  { %31 = vst.msk [vmem:[#allocation5] sm:$0xf] %vm29_vm0, %v26_v6 }
  0x25   :  { %84 = shalt.err (!%p81_p12)
}
  0x26   :  { %s85_s22 = scalar_lea.hbm %s136_s1, 64 }
  0x27   :  { %p86_p13 = scmp.ne.s32.totalorder %s136_s1, %s85_s22  ;;  %p89_p0 = scmp.lt.u32.totalorder %s85_s22, %s136_s1 }
  0x29   :  { %p91_p1 = pnand %p89_p0, %p86_p13 }
  0x2b   :  { %94 = shalt.err (!%p91_p1)
}
  0x2c   :  { %41 = dma.vmem_to_hbm [thread:$0]  %s39_s19, 64, %s136_s1, [#allocation4]  }
  0x2d   :  { %97 = dma.done.wait [#allocation4], 64  }
  0x2e   :  { %98 = vsyncadd [#allocation4], 4294967232 }
  0x2f   :  { %45 = vsyncpa [#allocation3], 1 }
  0x30   :  { %46 = vsyncpa [#allocation4], 1 }

</bundles_post_ra>
